<compile_context>
chip_gen: v7x
topology: tpu7x:2x2x1
jax: 0.10.0
libtpu: 0.0.40
codegen_flags: <defaults>
</compile_context>

<pallas_src>
import math

import jax
import jax.numpy as jnp
from jax import lax
from jax.experimental import pallas as pl
from jax.experimental.pallas import tpu as pltpu


# ---------------------------------------------------------------------------
# K/V projection kernel: Y = bf16(X) @ W_t   (W_t = W.T, pre-cast to bf16).
# f32 -> bf16 cast happens here (free VPU filler) instead of a wrapper pass.
# ---------------------------------------------------------------------------
def _kv_proj_kernel(k_ref, v_ref, wkt_ref, wvt_ref, ok_ref, ov_ref):
    kb = k_ref[...].astype(jnp.bfloat16)
    vb = v_ref[...].astype(jnp.bfloat16)
    ok_ref[...] = jnp.dot(kb, wkt_ref[...],
                          preferred_element_type=jnp.float32).astype(ok_ref.dtype)
    ov_ref[...] = jnp.dot(vb, wvt_ref[...],
                          preferred_element_type=jnp.float32).astype(ov_ref.dtype)


# ---------------------------------------------------------------------------
# Fused flash-attention kernel (online softmax).
#   refs (squeezed): q_raw (tq, Din) f32, wqt (Din, E) bf16 (scale folded in),
#                    k/v (tk, E) bf16, o (tq, E) f32 (doubles as accumulator)
#   scratch: qp (tq, E) bf16, m/l (tq, 128) f32 lane-dense stats
# ---------------------------------------------------------------------------
def _flash_kernel(q_ref, wqt_ref, k_ref, v_ref, o_ref, qp_ref, m_ref, l_ref):
    kv = pl.program_id(2)

    @pl.when(kv == 0)
    def _init():
        # Project + scale the resident q tile once per (batch, q-tile); it
        # stays in VMEM scratch for the whole kv loop (never written to HBM).
        qp = jnp.dot(q_ref[...].astype(jnp.bfloat16), wqt_ref[...],
                     preferred_element_type=jnp.float32)
        qp_ref[...] = qp.astype(qp_ref.dtype)
        m_ref[...] = jnp.full(m_ref.shape, -jnp.inf, dtype=m_ref.dtype)
        l_ref[...] = jnp.zeros(l_ref.shape, dtype=l_ref.dtype)
        o_ref[...] = jnp.zeros(o_ref.shape, dtype=o_ref.dtype)

    qp = qp_ref[...]        # (tq, E) bf16, pre-scaled
    k = k_ref[...]          # (tk, E) bf16
    v = v_ref[...]          # (tk, E) bf16

    # scores = q @ k^T : contract last dims directly — no in-kernel transpose.
    s = lax.dot_general(qp, k, (((1,), (1,)), ((), ())),
                        preferred_element_type=jnp.float32)      # (tq, tk) f32

    m_prev = m_ref[...]                                          # (tq, 128)
    m_new = jnp.maximum(m_prev, jnp.max(s, axis=-1, keepdims=True))
    alpha = jnp.exp(m_prev[:, :1] - m_new[:, :1])                # (tq, 1)
    # TODO(synk): on v6e/v7x the exp below could run in bf16 (EUP relief) with
    # an f32 row-sum; kept f32 so the same kernel stays optimal on v5e.
    p = jnp.exp(s - m_new[:, :1])                                # (tq, tk) f32
    l_ref[...] = alpha * l_ref[...] + jnp.sum(p, axis=-1, keepdims=True)
    o_ref[...] = alpha * o_ref[...] + jnp.dot(
        p.astype(v.dtype), v, preferred_element_type=jnp.float32)
    m_ref[...] = m_new

    @pl.when(kv == pl.num_programs(2) - 1)
    def _finalize():
        # Exact reciprocal: runs once per q tile, essentially free.
        inv_l = pl.reciprocal(l_ref[...], approx=False)
        o_ref[...] = o_ref[...] * inv_l[:, :1]


def _pick_tile(n, candidates):
    for c in candidates:
        if c <= n and n % c == 0:
            return c
    return n  # full extent is always a legal block size


def attention(q, k, v, wq, wk, wv, *, tq=512, tk=512):
    """q, k, v: [B, S, Din] f32; wq/wk/wv: [E, Din] (nn.Linear layout).
    Returns [B, S, E] float32, matching Attention.forward."""
    B, S, Din = q.shape
    E = wq.shape[0]
    scale = 1.0 / math.sqrt(float(E))

    # Pre-transpose the (tiny) weights once in XLA; fold 1/sqrt(dk) into Wq in
    # f32 before the bf16 cast.  Activations stay f32 and are cast in-kernel.
    wqt = (wq.T * scale).astype(jnp.bfloat16)   # (Din, E)
    wkt = wk.T.astype(jnp.bfloat16)
    wvt = wv.T.astype(jnp.bfloat16)

    BS = B * S
    kb = k.reshape(BS, Din)                      # free reshape, still f32
    vb = v.reshape(BS, Din)

    # --- K/V projection -----------------------------------------------------
    tm = _pick_tile(BS, (2048, 1024, 512, 256, 128))

    x_spec = pl.BlockSpec((tm, Din), lambda i: (i, 0))
    w_spec = pl.BlockSpec((Din, E), lambda i: (0, 0))    # constant → resident
    y_spec = pl.BlockSpec((tm, E), lambda i: (i, 0))
    proj_out = jax.ShapeDtypeStruct((BS, E), jnp.bfloat16)

    Kp, Vp = pl.pallas_call(
        _kv_proj_kernel,
        out_shape=(proj_out, proj_out),
        grid_spec=pltpu.PrefetchScalarGridSpec(
            num_scalar_prefetch=0,
            grid=(BS // tm,),
            in_specs=[x_spec, x_spec, w_spec, w_spec],
            out_specs=[y_spec, y_spec],
        ),
        compiler_params=pltpu.CompilerParams(
            dimension_semantics=("parallel",),
        ),
    )(kb, vb, wkt, wvt)

    Kp = Kp.reshape(B, S, E)
    Vp = Vp.reshape(B, S, E)

    # --- Fused Q-projection + flash attention --------------------------------
    # Large tiles keep the kv loop compute-bound (ridge needs tq >= ~256 on
    # v5e, ~310 on v7x); VMEM fits comfortably within default scoped limits.
    tq = _pick_tile(S, (tq, 1024, 512, 256, 128))
    tk = _pick_tile(S, (tk, 512, 256, 128))

    q_spec = pl.BlockSpec((pl.Squeezed(), tq, Din), lambda b, qi, ki: (b, qi, 0))
    wq_spec = pl.BlockSpec((Din, E), lambda b, qi, ki: (0, 0))
    kv_spec = pl.BlockSpec((pl.Squeezed(), tk, E), lambda b, qi, ki: (b, ki, 0))
    o_spec = pl.BlockSpec((pl.Squeezed(), tq, E), lambda b, qi, ki: (b, qi, 0))

    return pl.pallas_call(
        _flash_kernel,
        out_shape=jax.ShapeDtypeStruct((B, S, E), jnp.float32),
        grid_spec=pltpu.PrefetchScalarGridSpec(
            num_scalar_prefetch=0,
            grid=(B, S // tq, S // tk),
            in_specs=[q_spec, wq_spec, kv_spec, kv_spec],
            out_specs=o_spec,
            scratch_shapes=[
                pltpu.VMEM((tq, E), jnp.bfloat16),    # projected + scaled Q tile
                pltpu.VMEM((tq, 128), jnp.float32),   # running max m (lane-dense)
                pltpu.VMEM((tq, 128), jnp.float32),   # running sum l (lane-dense)
            ],
        ),
        compiler_params=pltpu.CompilerParams(
            dimension_semantics=("parallel", "parallel", "arbitrary"),
        ),
    )(q, wqt, Kp, Vp)


def _reference(q, k, v, wq, wk, wv):
    Q = jnp.einsum("bsd,ed->bse", q, wq)
    K = jnp.einsum("bsd,ed->bse", k, wk)
    V = jnp.einsum("bsd,ed->bse", v, wv)
    dk = Q.shape[-1]
    scores = jnp.einsum("bqe,bke->bqk", Q, K) / jnp.sqrt(jnp.float32(dk))
    w = jax.nn.softmax(scores, axis=-1)
    return jnp.einsum("bqk,bke->bqe", w, V)


if __name__ == "__main__":
    # Lane-dense demo shapes (Din = E = 128); S exercises the online-softmax
    # path while keeping B * S//tq >= 2 parallel tiles for megacore sharding.
    B, S, Din, E = 2, 256, 128, 128

    key = jax.random.PRNGKey(0)
    kq, kk, kv_, kwq, kwk, kwv = jax.random.split(key, 6)

    q = jax.random.normal(kq, (B, S, Din), dtype=jnp.float32)
    k = jax.random.normal(kk, (B, S, Din), dtype=jnp.float32)
    v = jax.random.normal(kv_, (B, S, Din), dtype=jnp.float32)

    # nn.Linear-style uniform(-1/sqrt(Din), 1/sqrt(Din)) init, bias=False.
    bound = 1.0 / math.sqrt(Din)
    wq = jax.random.uniform(kwq, (E, Din), jnp.float32, -bound, bound)
    wk = jax.random.uniform(kwk, (E, Din), jnp.float32, -bound, bound)
    wv = jax.random.uniform(kwv, (E, Din), jnp.float32, -bound, bound)

    out = attention(q, k, v, wq, wk, wv)
    out = jax.block_until_ready(out)

    ref = _reference(q, k, v, wq, wk, wv)
    assert out.shape == (B, S, E)
    # bf16 MXU inputs → slightly looser tolerance than pure f32.
    max_err = float(jnp.max(jnp.abs(out - ref)))
    assert jnp.allclose(out, ref, atol=3e-2, rtol=3e-2), f"max abs err {max_err}"

    print("KERNEL_OK")
</pallas_src>

<mosaic_0001>
module attributes {stable_mosaic.version = 11 : i64} {
  func.func @_kv_proj_kernel(%arg0: i32, %arg1: memref<512x128xf32, #tpu.memory_space<vmem>>, %arg2: memref<512x128xf32, #tpu.memory_space<vmem>>, %arg3: memref<128x128xbf16, #tpu.memory_space<vmem>>, %arg4: memref<128x128xbf16, #tpu.memory_space<vmem>>, %arg5: memref<512x128xbf16, #tpu.memory_space<vmem>>, %arg6: memref<512x128xbf16, #tpu.memory_space<vmem>>) attributes {dimension_semantics = [#tpu.dimension_semantics<parallel>], iteration_bounds = array<i64: 1>, scalar_prefetch = 0 : i64, scratch_operands = 0 : i64, tpu.core_type = #tpu.core_type<tc>, window_params = [{transform_indices = @transform_0, window_bounds = array<i64: 512, 128>}, {transform_indices = @transform_1, window_bounds = array<i64: 512, 128>}, {pipeline_mode = #tpu.pipeline_mode<synchronous>, transform_indices = @transform_2, window_bounds = array<i64: 128, 128>}, {pipeline_mode = #tpu.pipeline_mode<synchronous>, transform_indices = @transform_3, window_bounds = array<i64: 128, 128>}, {transform_indices = @transform_4, window_bounds = array<i64: 512, 128>}, {transform_indices = @transform_5, window_bounds = array<i64: 512, 128>}]} {
    %c0 = arith.constant 0 : index
    %c0_0 = arith.constant 0 : index
    %0 = vector.load %arg1[%c0, %c0_0] : memref<512x128xf32, #tpu.memory_space<vmem>>, vector<512x128xf32>
    %1 = arith.truncf %0 : vector<512x128xf32> to vector<512x128xbf16>
    %c0_1 = arith.constant 0 : index
    %c0_2 = arith.constant 0 : index
    %2 = vector.load %arg2[%c0_1, %c0_2] : memref<512x128xf32, #tpu.memory_space<vmem>>, vector<512x128xf32>
    %3 = arith.truncf %2 : vector<512x128xf32> to vector<512x128xbf16>
    %c0_3 = arith.constant 0 : index
    %c0_4 = arith.constant 0 : index
    %4 = vector.load %arg3[%c0_3, %c0_4] : memref<128x128xbf16, #tpu.memory_space<vmem>>, vector<128x128xbf16>
    %cst = arith.constant dense<0.000000e+00> : vector<512x128xf32>
    %5 = tpu.matmul %1, %4, %cst {dimension_numbers = #tpu.dot_dimension_numbers<[1], [0], [0], [1], [0, 0, 1, 1], [], []>} : vector<512x128xbf16>, vector<128x128xbf16>, vector<512x128xf32> -> vector<512x128xf32>
    %6 = arith.truncf %5 : vector<512x128xf32> to vector<512x128xbf16>
    %c0_5 = arith.constant 0 : index
    %c0_6 = arith.constant 0 : index
    %7 = vector.load %arg5[%c0_5, %c0_6] : memref<512x128xbf16, #tpu.memory_space<vmem>>, vector<512x128xbf16>
    tpu.vector_store %arg5[%c0_5, %c0_6], %6 {strides = array<i32>} : memref<512x128xbf16, #tpu.memory_space<vmem>>, vector<512x128xbf16>,
    %c0_7 = arith.constant 0 : index
    %c0_8 = arith.constant 0 : index
    %8 = vector.load %arg4[%c0_7, %c0_8] : memref<128x128xbf16, #tpu.memory_space<vmem>>, vector<128x128xbf16>
    %cst_9 = arith.constant dense<0.000000e+00> : vector<512x128xf32>
    %9 = tpu.matmul %3, %8, %cst_9 {dimension_numbers = #tpu.dot_dimension_numbers<[1], [0], [0], [1], [0, 0, 1, 1], [], []>} : vector<512x128xbf16>, vector<128x128xbf16>, vector<512x128xf32> -> vector<512x128xf32>
    %10 = arith.truncf %9 : vector<512x128xf32> to vector<512x128xbf16>
    %c0_10 = arith.constant 0 : index
    %c0_11 = arith.constant 0 : index
    %11 = vector.load %arg6[%c0_10, %c0_11] : memref<512x128xbf16, #tpu.memory_space<vmem>>, vector<512x128xbf16>
    tpu.vector_store %arg6[%c0_10, %c0_11], %10 {strides = array<i32>} : memref<512x128xbf16, #tpu.memory_space<vmem>>, vector<512x128xbf16>,
    return
  }
  func.func @transform_0(%arg0: i32) -> (i32, i32) {
    %c0_i32 = arith.constant 0 : i32
    %c0_i32_0 = arith.constant 0 : i32
    return %arg0, %c0_i32 : i32, i32
  }
  func.func @transform_1(%arg0: i32) -> (i32, i32) {
    %c0_i32 = arith.constant 0 : i32
    %c0_i32_0 = arith.constant 0 : i32
    return %arg0, %c0_i32 : i32, i32
  }
  func.func @transform_2(%arg0: i32) -> (i32, i32) {
    %c0_i32 = arith.constant 0 : i32
    %c0_i32_0 = arith.constant 0 : i32
    %c0_i32_1 = arith.constant 0 : i32
    return %c0_i32, %c0_i32_0 : i32, i32
  }
  func.func @transform_3(%arg0: i32) -> (i32, i32) {
    %c0_i32 = arith.constant 0 : i32
    %c0_i32_0 = arith.constant 0 : i32
    %c0_i32_1 = arith.constant 0 : i32
    return %c0_i32, %c0_i32_0 : i32, i32
  }
  func.func @transform_4(%arg0: i32) -> (i32, i32) {
    %c0_i32 = arith.constant 0 : i32
    %c0_i32_0 = arith.constant 0 : i32
    return %arg0, %c0_i32 : i32, i32
  }
  func.func @transform_5(%arg0: i32) -> (i32, i32) {
    %c0_i32 = arith.constant 0 : i32
    %c0_i32_0 = arith.constant 0 : i32
    return %arg0, %c0_i32 : i32, i32
  }
}

</mosaic_0001>

<bundles_post_ra>
// kernel: tpu_custom_call.1
= control target key start
LH: loop header
LB: loop body
LE: loop exit
PB: predicated region body
PF: predicated region fallthrough
CT: control target
= control target key end

     0   :  { %11 = vsyncpa [#allocation3], 0  ;;  %s2850_s0 = inlined_call_operand.hbm [shape: f32[512,128], index: 0, kind: input, shape index: {}]   ;;  %s2851_s1 = inlined_call_operand.hbm [shape: f32[512,128], index: 1, kind: input, shape index: {}]   ;;  %s2852_s2 = inlined_call_operand.hbm [shape: bf16[128,128], index: 2, kind: input, shape index: {}]   ;;  %s2853_s3 = inlined_call_operand.hbm [shape: bf16[128,128], index: 3, kind: input, shape index: {}]   ;;  %s2854_s4 = inlined_call_operand.hbm [shape: bf16[512,128], index: 4, kind: output, shape index: {0}]   ;;  %s2855_s5 = inlined_call_operand.hbm [shape: bf16[512,128], index: 5, kind: output, shape index: {1}]  }
   0x1   :  { %12 = vsyncpa [#allocation6], 0 }
   0x2   :  { %13 = vsyncpa [#allocation9], 0 }
   0x3   :  { %14 = vsyncpa [#allocation4], 0 }
   0x4   :  { %15 = vsyncpa [#allocation12], 0  ;;  %s2712_s18 = smov [#allocation5]   ;;  %s2713_s20 = smov [#allocation2]  }
   0x5   :  { %s33_s19 = sshll.u32 %s2712_s18, 4  ;;  %s21_s21 = sshll.u32 %s2713_s20, 4  ;;  %s34_s19 = int_to_ptr.vmem [resolvable:$true] %s33_s19  ;;  %s2752_s21 = int_to_ptr.vmem [resolvable:$true] %s21_s21 }
   0x6   :  { %s2570_s24 = scalar_lea.hbm %s2851_s1, 8192 }
   0x7   :  { %p2571_p0 = scmp.ne.s32.totalorder %s2851_s1, %s2570_s24  ;;  %p2574_p1 = scmp.lt.u32.totalorder %s2570_s24, %s2851_s1 }
   0x9   :  { %p2576_p2 = pnand %p2574_p1, %p2571_p0 }
   0xb   :  { %2579 = shalt.err (!%p2576_p2)
}
   0xc   :  { %s2580_s29 = scalar_lea.vmem %s34_s19, 8192  ;;  %p2585_p4 = scmp.lt.s32.totalorder %s34_s19, %s34_s19 }
   0xd   :  { %p2581_p3 = scmp.ne.s32.totalorder %s34_s19, %s2580_s29  ;;  %p2586_p5 = scmp.lt.s32.totalorder %s2580_s29, %s2580_s29 }
   0xf   :  { %p2587_p6 = por %p2586_p5, %p2585_p4 }
  0x11   :  { %p2588_p7 = pnand %p2587_p6, %p2581_p3 }
  0x13   :  { %2591 = shalt.err (!%p2588_p7)
}
  0x14   :  { %s2714_s30 = smov 128   ;;  %s2715_s6 = smov 8  }
  0x15   :  { %39 = dma.hbm_to_vmem [thread:$0]  %s2851_s1, 8192, %s34_s19, [#allocation6], %s2714_s30, %s2714_s30, %s2715_s6  }
  0x16   :  { %s2592_s11 = scalar_lea.hbm %s2850_s0, 8192 }
  0x17   :  { %p2593_p8 = scmp.ne.s32.totalorder %s2850_s0, %s2592_s11  ;;  %p2596_p9 = scmp.lt.u32.totalorder %s2592_s11, %s2850_s0 }
  0x19   :  { %p2598_p10 = pnand %p2596_p9, %p2593_p8 }
  0x1b   :  { %2601 = shalt.err (!%p2598_p10)
}
  0x1c   :  { %s2602_s16 = scalar_lea.vmem %s2752_s21, 8192  ;;  %p2607_p12 = scmp.lt.s32.totalorder %s2752_s21, %s2752_s21 }
  0x1d   :  { %p2603_p11 = scmp.ne.s32.totalorder %s2752_s21, %s2602_s16  ;;  %p2608_p13 = scmp.lt.s32.totalorder %s2602_s16, %s2602_s16 }
  0x1f   :  { %p2609_p0 = por %p2608_p13, %p2607_p12 }
  0x21   :  { %p2610_p1 = pnand %p2609_p0, %p2603_p11 }
  0x23   :  { %2613 = shalt.err (!%p2610_p1)
}
  0x24   :  { %27 = dma.hbm_to_vmem [thread:$0]  %s2850_s0, 8192, %s2752_s21, [#allocation3], %s2714_s30, %s2714_s30, %s2715_s6  }
  0x25   :  { %s2716_s18 = smov [#allocation7]   ;;  %s2614_s23 = scalar_lea.hbm %s2852_s2, 1024 }
  0x26   :  { %s45_s19 = sshll.u32 %s2716_s18, 4  ;;  %p2615_p2 = scmp.ne.s32.totalorder %s2852_s2, %s2614_s23  ;;  %s46_s19 = int_to_ptr.vmem [resolvable:$true] %s45_s19 }
  0x27   :  { %p2618_p3 = scmp.lt.u32.totalorder %s2614_s23, %s2852_s2 }
  0x29   :  { %p2620_p4 = pnand %p2618_p3, %p2615_p2 }
  0x2b   :  { %2623 = shalt.err (!%p2620_p4)
}
  0x2c   :  { %s2624_s28 = scalar_lea.vmem %s46_s19, 1024  ;;  %p2629_p6 = scmp.lt.s32.totalorder %s46_s19, %s46_s19 }
  0x2d   :  { %p2625_p5 = scmp.ne.s32.totalorder %s46_s19, %s2624_s28  ;;  %p2630_p7 = scmp.lt.s32.totalorder %s2624_s28, %s2624_s28 }
  0x2f   :  { %p2631_p8 = por %p2630_p7, %p2629_p6 }
  0x31   :  { %p2632_p9 = pnand %p2631_p8, %p2625_p5 }
  0x33   :  { %2635 = shalt.err (!%p2632_p9)
}
  0x34   :  { %s2717_s0 = smov 64   ;;  %s2718_s21 = smov 4  }
  0x35   :  { %51 = dma.hbm_to_vmem [thread:$0]  %s2852_s2, 1024, %s46_s19, [#allocation6], %s2717_s0, %s2717_s0, %s2718_s21  }
  0x36   :  { %s2719_s6 = smov [#allocation8]   ;;  %s2636_s10 = scalar_lea.hbm %s2853_s3, 1024 }
  0x37   :  { %s57_s7 = sshll.u32 %s2719_s6, 4  ;;  %p2637_p10 = scmp.ne.s32.totalorder %s2853_s3, %s2636_s10  ;;  %s58_s7 = int_to_ptr.vmem [resolvable:$true] %s57_s7 }
  0x38   :  { %p2640_p11 = scmp.lt.u32.totalorder %s2636_s10, %s2853_s3 }
  0x3a   :  { %p2642_p12 = pnand %p2640_p11, %p2637_p10 }
  0x3c   :  { %2645 = shalt.err (!%p2642_p12)
}
  0x3d   :  { %s2646_s15 = scalar_lea.vmem %s58_s7, 1024  ;;  %p2651_p0 = scmp.lt.s32.totalorder %s58_s7, %s58_s7 }
  0x3e   :  { %p2647_p13 = scmp.ne.s32.totalorder %s58_s7, %s2646_s15  ;;  %p2652_p1 = scmp.lt.s32.totalorder %s2646_s15, %s2646_s15 }
  0x40   :  { %p2653_p2 = por %p2652_p1, %p2651_p0 }
  0x42   :  { %p2654_p3 = pnand %p2653_p2, %p2647_p13 }
  0x44   :  { %2657 = shalt.err (!%p2654_p3)
}
  0x45   :  { %63 = dma.hbm_to_vmem [thread:$0]  %s2853_s3, 1024, %s58_s7, [#allocation9], %s2717_s0, %s2717_s0, %s2718_s21  }
  0x46   :  { %2702 = dma.done.wait [#allocation3], 8192  }
  0x47   :  { %2703 = vsyncadd [#allocation3], 4294959104 }
  0x48   :  { %2704 = dma.done.wait [#allocation6], 9216  }
  0x49   :  { %2705 = vsyncadd [#allocation6], 4294958080 }
  0x4a   :  { %2706 = dma.done.wait [#allocation9], 1024  }
  0x4b   :  { %2707 = vsyncadd [#allocation9], 4294966272  ;;  %v2554_v0 = vld [vmem:[#allocation7] sm:$0xff]   ;;  %v2556_v2 = vld [vmem:[#allocation7 + $0x8] sm:$0xff]   ;;  %s2720_s3 = smov [#allocation10]   ;;  %s2721_s17 = smov [#allocation11]  }
  0x4c   :  { %v2555_v1 = vld [vmem:[#allocation8] sm:$0xff]   ;;  %2384 = vmatprep.subr.bf16.mxu0 %v2554_v0  ;;  %v2557_v3 = vld [vmem:[#allocation8 + $0x8] sm:$0xff]   ;;  %v2558_v4 = vld [vmem:[#allocation7 + $0x10] sm:$0xff]   ;;  %s1620_s1 = sshll.u32 %s2720_s3, 4  ;;  %s1632_s18 = sshll.u32 %s2721_s17, 4  ;;  %s1621_s1 = int_to_ptr.vmem [resolvable:$true] %s1620_s1  ;;  %s2813_s18 = int_to_ptr.vmem [resolvable:$true] %s1632_s18 }
  0x4d   :  { %2464 = vmatprep.subr.bf16.mxu1 %v2555_v1  ;;  %2385 = vmatpush3.bf16.msra.mxu0 %v2554_v0  ;;  %v2559_v5 = vld [vmem:[#allocation8 + $0x10] sm:$0xff]   ;;  %v2560_v6 = vld [vmem:[#allocation7 + $0x18] sm:$0xff]   ;;  %v2562_v8 = vld [vmem:[#allocation7 + $0x20] sm:$0xff]   ;;  %s2658_s19 = scalar_lea.vmem %s1621_s1, 4096  ;;  %p2663_p5 = scmp.lt.s32.totalorder %s1621_s1, %s1621_s1 }
  0x4e   :  { %2465 = vmatpush3.bf16.msra.mxu1 %v2555_v1  ;;  %2386 = vmatprep.subr.bf16.mxu0 %v2556_v2  ;;  %v2561_v7 = vld [vmem:[#allocation8 + $0x18] sm:$0xff]   ;;  %v2563_v9 = vld [vmem:[#allocation8 + $0x20] sm:$0xff]   ;;  %v2564_v10 = vld [vmem:[#allocation7 + $0x28] sm:$0xff]   ;;  %p2659_p4 = scmp.ne.s32.totalorder %s1621_s1, %s2658_s19  ;;  %p2664_p6 = scmp.lt.s32.totalorder %s2658_s19, %s2658_s19 }
  0x4f   :  { %2466 = vmatprep.subr.bf16.mxu1 %v2557_v3  ;;  %v77_v11 = vld [vmem:[#allocation2] sm:$0xff]  ;;  %v78_v12 = vld [vmem:[#allocation2 + $0x8] sm:$0xff]  ;;  %v2566_v18 = vld [vmem:[#allocation7 + $0x30] sm:$0xff]  }
  0x50   :  { %v173_v13 = vld [vmem:[#allocation5] sm:$0xff]  ;;  %v2565_v14 = vld [vmem:[#allocation8 + $0x28] sm:$0xff]   ;;  %v141_v15 = vpack.c.bf16 %v78_v12, %v77_v11  ;;  %v2567_v19 = vld [vmem:[#allocation8 + $0x30] sm:$0xff]   ;;  %p2665_p7 = por %p2664_p6, %p2663_p5 }
  0x51   :  { %2387 = vmatpush3.bf16.msra.mxu0 %v2556_v2  ;;  %v174_v16 = vld [vmem:[#allocation5 + $0x8] sm:$0xff]  ;;  %v2568_v20 = vld [vmem:[#allocation7 + $0x38] sm:$0xff]   ;;  %v79_v22 = vld [vmem:[#allocation2 + $0x10] sm:$0xff] }
  0x52   :  { %2467 = vmatpush3.bf16.msra.mxu1 %v2557_v3  ;;  %2388 = vmatprep.subr.bf16.mxu0 %v2558_v4  ;;  %v237_v17 = vpack.c.bf16 %v174_v16, %v173_v13  ;;  %v2569_v21 = vld [vmem:[#allocation8 + $0x38] sm:$0xff]   ;;  %v175_v24 = vld [vmem:[#allocation5 + $0x10] sm:$0xff]  ;;  %v81_v26 = vld [vmem:[#allocation2 + $0x20] sm:$0xff]  ;;  %p2666_p8 = pnand %p2665_p7, %p2659_p4 }
  0x53   :  { %2468 = vmatprep.subr.bf16.mxu1 %v2559_v5  ;;  %2400 = vmatprep.mubr.bf16.mxu0 %v141_v15  ;;  %v80_v23 = vld [vmem:[#allocation2 + $0x18] sm:$0xff]  ;;  %v82_v27 = vld [vmem:[#allocation2 + $0x28] sm:$0xff]  ;;  %v177_v28 = vld [vmem:[#allocation5 + $0x20] sm:$0xff] }
  0x54   :  { %2480 = vmatprep.mubr.bf16.mxu1 %v237_v17  ;;  %v176_v25 = vld [vmem:[#allocation5 + $0x18] sm:$0xff]  ;;  %v178_v29 = vld [vmem:[#allocation5 + $0x28] sm:$0xff]  ;;  %v142_v30 = vpack.c.bf16 %v80_v23, %v79_v22  ;;  %v143_v32 = vpack.c.bf16 %v82_v27, %v81_v26  ;;  %v83_v34 = vld [vmem:[#allocation2 + $0x30] sm:$0xff] }
  0x55   :  { %2389 = vmatpush3.bf16.msra.mxu0 %v2558_v4  ;;  %v238_v31 = vpack.c.bf16 %v176_v25, %v175_v24  ;;  %v239_v33 = vpack.c.bf16 %v178_v29, %v177_v28  ;;  %v84_v35 = vld [vmem:[#allocation2 + $0x38] sm:$0xff]  ;;  %v179_v36 = vld [vmem:[#allocation5 + $0x30] sm:$0xff]  ;;  %v85_v38 = vld [vmem:[#allocation2 + $0x40] sm:$0xff] }
  0x56   :  { %2469 = vmatpush3.bf16.msra.mxu1 %v2559_v5  ;;  %2390 = vmatprep.subr.bf16.mxu0 %v2560_v6  ;;  %v180_v37 = vld [vmem:[#allocation5 + $0x38] sm:$0xff]  ;;  %v86_v39 = vld [vmem:[#allocation2 + $0x48] sm:$0xff]  ;;  %v181_v40 = vld [vmem:[#allocation5 + $0x40] sm:$0xff]  ;;  %v144_v42 = vpack.c.bf16 %v84_v35, %v83_v34 }
  0x57   :  { %2470 = vmatprep.subr.bf16.mxu1 %v2561_v7  ;;  %v182_v41 = vld [vmem:[#allocation5 + $0x48] sm:$0xff]  ;;  %v240_v43 = vpack.c.bf16 %v180_v37, %v179_v36  ;;  %v145_v44 = vpack.c.bf16 %v86_v39, %v85_v38  ;;  %v87_v46 = vld [vmem:[#allocation2 + $0x50] sm:$0xff]  ;;  %v88_v47 = vld [vmem:[#allocation2 + $0x58] sm:$0xff] }
  0x58   :  { %v241_v45 = vpack.c.bf16 %v182_v41, %v181_v40  ;;  %v183_v48 = vld [vmem:[#allocation5 + $0x50] sm:$0xff]  ;;  %v184_v49 = vld [vmem:[#allocation5 + $0x58] sm:$0xff]  ;;  %v89_v50 = vld [vmem:[#allocation2 + $0x60] sm:$0xff]  ;;  %v146_v54 = vpack.c.bf16 %v88_v47, %v87_v46 }
  0x59   :  { %2391 = vmatpush3.bf16.msra.mxu0 %v2560_v6  ;;  %v90_v51 = vld [vmem:[#allocation2 + $0x68] sm:$0xff]  ;;  %v185_v52 = vld [vmem:[#allocation5 + $0x60] sm:$0xff]  ;;  %v242_v55 = vpack.c.bf16 %v184_v49, %v183_v48  ;;  %v91_v58 = vld [vmem:[#allocation2 + $0x70] sm:$0xff] }
  0x5a   :  { %2471 = vmatpush3.bf16.msra.mxu1 %v2561_v7  ;;  %2392 = vmatprep.subr.bf16.mxu0 %v2562_v8  ;;  %v186_v53 = vld [vmem:[#allocation5 + $0x68] sm:$0xff]  ;;  %v147_v56 = vpack.c.bf16 %v90_v51, %v89_v50  ;;  %v92_v59 = vld [vmem:[#allocation2 + $0x78] sm:$0xff]  ;;  %v187_v60 = vld [vmem:[#allocation5 + $0x70] sm:$0xff] }
  0x5b   :  { %2472 = vmatprep.subr.bf16.mxu1 %v2563_v9  ;;  %v243_v57 = vpack.c.bf16 %v186_v53, %v185_v52  ;;  %v188_v61 = vld [vmem:[#allocation5 + $0x78] sm:$0xff]  ;;  %v93_v62 = vld [vmem:[#allocation2 + $0x80] sm:$0xff]  ;;  %v94_v63 = vld [vmem:[#allocation2 + $0x88] sm:$0xff]  ;;  %v148_v2 = vpack.c.bf16 %v92_v59, %v91_v58 }
  0x5c   :  { %v189_v0 = vld [vmem:[#allocation5 + $0x80] sm:$0xff]  ;;  %v190_v1 = vld [vmem:[#allocation5 + $0x88] sm:$0xff]  ;;  %v244_v3 = vpack.c.bf16 %v188_v61, %v187_v60  ;;  %v149_v4 = vpack.c.bf16 %v94_v63, %v93_v62  ;;  %v95_v6 = vld [vmem:[#allocation2 + $0x90] sm:$0xff] }
  0x5d   :  { %2393 = vmatpush3.bf16.msra.mxu0 %v2562_v8  ;;  %v245_v5 = vpack.c.bf16 %v190_v1, %v189_v0  ;;  %v96_v7 = vld [vmem:[#allocation2 + $0x98] sm:$0xff]  ;;  %v191_v8 = vld [vmem:[#allocation5 + $0x90] sm:$0xff]  ;;  %v98_v11 = vld [vmem:[#allocation2 + $0xa8] sm:$0xff] }
  0x5e   :  { %2473 = vmatpush3.bf16.msra.mxu1 %v2563_v9  ;;  %2394 = vmatprep.subr.bf16.mxu0 %v2564_v10  ;;  %v192_v9 = vld [vmem:[#allocation5 + $0x98] sm:$0xff]  ;;  %v193_v12 = vld [vmem:[#allocation5 + $0xa0] sm:$0xff]  ;;  %v194_v13 = vld [vmem:[#allocation5 + $0xa8] sm:$0xff] }
  0x5f   :  { %2474 = vmatprep.subr.bf16.mxu1 %v2565_v14  ;;  %v246_v15 = vpack.c.bf16 %v192_v9, %v191_v8  ;;  %v247_v17 = vpack.c.bf16 %v194_v13, %v193_v12  ;;  %v101_v22 = vld [vmem:[#allocation2 + $0xc0] sm:$0xff]  ;;  %v102_v23 = vld [vmem:[#allocation2 + $0xc8] sm:$0xff] }
  0x60   :  { %v197_v24 = vld [vmem:[#allocation5 + $0xc0] sm:$0xff]  ;;  %v198_v25 = vld [vmem:[#allocation5 + $0xc8] sm:$0xff]  ;;  %v153_v28 = vpack.c.bf16 %v102_v23, %v101_v22 }
  0x61   :  { %2395 = vmatpush3.bf16.msra.mxu0 %v2564_v10  ;;  %v97_v10 = vld [vmem:[#allocation2 + $0xa0] sm:$0xff]  ;;  %v249_v29 = vpack.c.bf16 %v198_v25, %v197_v24  ;;  %v106_v35 = vld [vmem:[#allocation2 + $0xe8] sm:$0xff] }
  0x62   :  { %2475 = vmatpush3.bf16.msra.mxu1 %v2565_v14  ;;  %2396 = vmatprep.subr.bf16.mxu0 %v2566_v18  ;;  %v150_v14 = vpack.c.bf16 %v96_v7, %v95_v6  ;;  %v151_v16 = vpack.c.bf16 %v98_v11, %v97_v10  ;;  %v105_v34 = vld [vmem:[#allocation2 + $0xe0] sm:$0xff]  ;;  %v202_v37 = vld [vmem:[#allocation5 + $0xe8] sm:$0xff] }
  0x63   :  { %2476 = vmatprep.subr.bf16.mxu1 %v2567_v19  ;;  %v201_v36 = vld [vmem:[#allocation5 + $0xe0] sm:$0xff]  ;;  %v155_v40 = vpack.c.bf16 %v106_v35, %v105_v34  ;;  %v110_v47 = vld [vmem:[#allocation2 + $0x108] sm:$0xff] }
  0x64   :  { %v251_v41 = vpack.c.bf16 %v202_v37, %v201_v36  ;;  %v109_v46 = vld [vmem:[#allocation2 + $0x100] sm:$0xff]  ;;  %v206_v49 = vld [vmem:[#allocation5 + $0x108] sm:$0xff] }
  0x65   :  { %2397 = vmatpush3.bf16.msra.mxu0 %v2566_v18  ;;  %v99_v18 = vld [vmem:[#allocation2 + $0xb0] sm:$0xff]  ;;  %v205_v48 = vld [vmem:[#allocation5 + $0x100] sm:$0xff]  ;;  %v157_v52 = vpack.c.bf16 %v110_v47, %v109_v46  ;;  %v114_v59 = vld [vmem:[#allocation2 + $0x128] sm:$0xff] }
  0x66   :  { %2477 = vmatpush3.bf16.msra.mxu1 %v2567_v19  ;;  %2398 = vmatprep.subr.bf16.mxu0 %v2568_v20  ;;  %v100_v19 = vld [vmem:[#allocation2 + $0xb8] sm:$0xff]  ;;  %v253_v53 = vpack.c.bf16 %v206_v49, %v205_v48  ;;  %v113_v58 = vld [vmem:[#allocation2 + $0x120] sm:$0xff]  ;;  %v210_v61 = vld [vmem:[#allocation5 + $0x128] sm:$0xff] }
  0x67   :  { %2478 = vmatprep.subr.bf16.mxu1 %v2569_v21  ;;  %v152_v26 = vpack.c.bf16 %v100_v19, %v99_v18  ;;  %v209_v60 = vld [vmem:[#allocation5 + $0x120] sm:$0xff]  ;;  %v159_v0 = vpack.c.bf16 %v114_v59, %v113_v58  ;;  %v118_v7 = vld [vmem:[#allocation2 + $0x148] sm:$0xff] }
  0x68   :  { %v255_v1 = vpack.c.bf16 %v210_v61, %v209_v60  ;;  %v117_v6 = vld [vmem:[#allocation2 + $0x140] sm:$0xff]  ;;  %v214_v9 = vld [vmem:[#allocation5 + $0x148] sm:$0xff] }
  0x69   :  { %2399 = vmatpush3.bf16.msra.mxu0 %v2568_v20  ;;  %v195_v20 = vld [vmem:[#allocation5 + $0xb0] sm:$0xff]  ;;  %v213_v8 = vld [vmem:[#allocation5 + $0x140] sm:$0xff]  ;;  %v161_v12 = vpack.c.bf16 %v118_v7, %v117_v6  ;;  %v122_v19 = vld [vmem:[#allocation2 + $0x168] sm:$0xff] }
  0x6a   :  { %2479 = vmatpush3.bf16.msra.mxu1 %v2569_v21  ;;  %v196_v21 = vld [vmem:[#allocation5 + $0xb8] sm:$0xff]  ;;  %v257_v13 = vpack.c.bf16 %v214_v9, %v213_v8  ;;  %v121_v18 = vld [vmem:[#allocation2 + $0x160] sm:$0xff] }
  0x6b   :  { %v248_v27 = vpack.c.bf16 %v196_v21, %v195_v20  ;;  %v217_v20 = vld [vmem:[#allocation5 + $0x160] sm:$0xff]  ;;  %v218_v21 = vld [vmem:[#allocation5 + $0x168] sm:$0xff]  ;;  %v163_v24 = vpack.c.bf16 %v122_v19, %v121_v18 }
  0x6c   :  { %2401 = vmatmul.mubr.bf16.vlgmr.msra.gmra.mrb[0].mxu0 %v142_v30  ;;  %v103_v30 = vld [vmem:[#allocation2 + $0xd0] sm:$0xff]  ;;  %v259_v25 = vpack.c.bf16 %v218_v21, %v217_v20 }
  0x6d   :  { %2481 = vmatmul.mubr.bf16.vlgmr.msra.gmra.mrb[0].mxu1 %v238_v31  ;;  %2404 = vmatprep.mubr.bf16.mxu0 %v143_v32  ;;  %v104_v31 = vld [vmem:[#allocation2 + $0xd8] sm:$0xff]  ;;  %v199_v32 = vld [vmem:[#allocation5 + $0xd0] sm:$0xff] }
  0x6e   :  { %2484 = vmatprep.mubr.bf16.mxu1 %v239_v33  ;;  %v200_v33 = vld [vmem:[#allocation5 + $0xd8] sm:$0xff]  ;;  %v154_v38 = vpack.c.bf16 %v104_v31, %v103_v30  ;;  %v125_v30 = vld [vmem:[#allocation2 + $0x180] sm:$0xff]  ;;  %v126_v31 = vld [vmem:[#allocation2 + $0x188] sm:$0xff] }
  0x6f   :  { %v250_v39 = vpack.c.bf16 %v200_v33, %v199_v32  ;;  %v221_v32 = vld [vmem:[#allocation5 + $0x180] sm:$0xff]  ;;  %v222_v33 = vld [vmem:[#allocation5 + $0x188] sm:$0xff]  ;;  %v165_v36 = vpack.c.bf16 %v126_v31, %v125_v30 }
  0x70   :  { %v261_v37 = vpack.c.bf16 %v222_v33, %v221_v32 }
  0x74   :  { %2405 = vmatmul.mubr.bf16.gmra.mrb[4].mxu0 %v144_v42  ;;  %v107_v42 = vld [vmem:[#allocation2 + $0xf0] sm:$0xff] }
  0x75   :  { %2485 = vmatmul.mubr.bf16.gmra.mrb[4].mxu1 %v240_v43  ;;  %2408 = vmatprep.mubr.bf16.mxu0 %v145_v44  ;;  %v108_v43 = vld [vmem:[#allocation2 + $0xf8] sm:$0xff]  ;;  %v203_v44 = vld [vmem:[#allocation5 + $0xf0] sm:$0xff] }
  0x76   :  { %2488 = vmatprep.mubr.bf16.mxu1 %v241_v45  ;;  %v204_v45 = vld [vmem:[#allocation5 + $0xf8] sm:$0xff]  ;;  %v156_v50 = vpack.c.bf16 %v108_v43, %v107_v42  ;;  %v129_v42 = vld [vmem:[#allocation2 + $0x1a0] sm:$0xff]  ;;  %v130_v43 = vld [vmem:[#allocation2 + $0x1a8] sm:$0xff] }
  0x77   :  { %v252_v51 = vpack.c.bf16 %v204_v45, %v203_v44  ;;  %v225_v44 = vld [vmem:[#allocation5 + $0x1a0] sm:$0xff]  ;;  %v226_v45 = vld [vmem:[#allocation5 + $0x1a8] sm:$0xff]  ;;  %v167_v48 = vpack.c.bf16 %v130_v43, %v129_v42 }
  0x78   :  { %v263_v49 = vpack.c.bf16 %v226_v45, %v225_v44 }
  0x7c   :  { %2409 = vmatmul.mubr.bf16.gmra.mrb[8].mxu0 %v146_v54  ;;  %v111_v54 = vld [vmem:[#allocation2 + $0x110] sm:$0xff] }
  0x7d   :  { %2489 = vmatmul.mubr.bf16.gmra.mrb[8].mxu1 %v242_v55  ;;  %2412 = vmatprep.mubr.bf16.mxu0 %v147_v56  ;;  %v112_v55 = vld [vmem:[#allocation2 + $0x118] sm:$0xff]  ;;  %v207_v56 = vld [vmem:[#allocation5 + $0x110] sm:$0xff] }
  0x7e   :  { %2492 = vmatprep.mubr.bf16.mxu1 %v243_v57  ;;  %v208_v57 = vld [vmem:[#allocation5 + $0x118] sm:$0xff]  ;;  %v158_v62 = vpack.c.bf16 %v112_v55, %v111_v54  ;;  %v133_v54 = vld [vmem:[#allocation2 + $0x1c0] sm:$0xff]  ;;  %v134_v55 = vld [vmem:[#allocation2 + $0x1c8] sm:$0xff] }
  0x7f   :  { %v254_v63 = vpack.c.bf16 %v208_v57, %v207_v56  ;;  %v229_v56 = vld [vmem:[#allocation5 + $0x1c0] sm:$0xff]  ;;  %v230_v57 = vld [vmem:[#allocation5 + $0x1c8] sm:$0xff]  ;;  %v169_v60 = vpack.c.bf16 %v134_v55, %v133_v54 }
  0x80   :  { %v265_v61 = vpack.c.bf16 %v230_v57, %v229_v56 }
  0x84   :  { %2413 = vmatmul.mubr.bf16.gmra.mrb[12].mxu0 %v148_v2  ;;  %v115_v2 = vld [vmem:[#allocation2 + $0x130] sm:$0xff] }
  0x85   :  { %2493 = vmatmul.mubr.bf16.gmra.mrb[12].mxu1 %v244_v3  ;;  %2416 = vmatprep.mubr.bf16.mxu0 %v149_v4  ;;  %v116_v3 = vld [vmem:[#allocation2 + $0x138] sm:$0xff]  ;;  %v211_v4 = vld [vmem:[#allocation5 + $0x130] sm:$0xff] }
  0x86   :  { %2496 = vmatprep.mubr.bf16.mxu1 %v245_v5  ;;  %v212_v5 = vld [vmem:[#allocation5 + $0x138] sm:$0xff]  ;;  %v160_v10 = vpack.c.bf16 %v116_v3, %v115_v2  ;;  %v137_v2 = vld [vmem:[#allocation2 + $0x1e0] sm:$0xff]  ;;  %v138_v3 = vld [vmem:[#allocation2 + $0x1e8] sm:$0xff] }
  0x87   :  { %v256_v11 = vpack.c.bf16 %v212_v5, %v211_v4  ;;  %v233_v4 = vld [vmem:[#allocation5 + $0x1e0] sm:$0xff]  ;;  %v234_v5 = vld [vmem:[#allocation5 + $0x1e8] sm:$0xff]  ;;  %v171_v8 = vpack.c.bf16 %v138_v3, %v137_v2 }
  0x88   :  { %v267_v9 = vpack.c.bf16 %v234_v5, %v233_v4 }
  0x8c   :  { %2417 = vmatmul.mubr.bf16.gmra.mrb[16].mxu0 %v150_v14  ;;  %v119_v14 = vld [vmem:[#allocation2 + $0x150] sm:$0xff] }
  0x8d   :  { %2497 = vmatmul.mubr.bf16.gmra.mrb[16].mxu1 %v246_v15  ;;  %2420 = vmatprep.mubr.bf16.mxu0 %v151_v16  ;;  %v120_v15 = vld [vmem:[#allocation2 + $0x158] sm:$0xff]  ;;  %v215_v16 = vld [vmem:[#allocation5 + $0x150] sm:$0xff] }
  0x8e   :  { %2500 = vmatprep.mubr.bf16.mxu1 %v247_v17  ;;  %v216_v17 = vld [vmem:[#allocation5 + $0x158] sm:$0xff]  ;;  %v162_v22 = vpack.c.bf16 %v120_v15, %v119_v14 }
  0x8f   :  { %v258_v23 = vpack.c.bf16 %v216_v17, %v215_v16 }
  0x94   :  { %2421 = vmatmul.mubr.bf16.gmra.mrb[20].mxu0 %v152_v26  ;;  %v123_v26 = vld [vmem:[#allocation2 + $0x170] sm:$0xff] }
  0x95   :  { %2501 = vmatmul.mubr.bf16.gmra.mrb[20].mxu1 %v248_v27  ;;  %2424 = vmatprep.mubr.bf16.mxu0 %v153_v28  ;;  %v124_v27 = vld [vmem:[#allocation2 + $0x178] sm:$0xff]  ;;  %v219_v28 = vld [vmem:[#allocation5 + $0x170] sm:$0xff] }
  0x96   :  { %2504 = vmatprep.mubr.bf16.mxu1 %v249_v29  ;;  %v220_v29 = vld [vmem:[#allocation5 + $0x178] sm:$0xff]  ;;  %v164_v34 = vpack.c.bf16 %v124_v27, %v123_v26 }
  0x97   :  { %v260_v35 = vpack.c.bf16 %v220_v29, %v219_v28 }
  0x9c   :  { %2425 = vmatmul.mubr.bf16.gmra.mrb[24].mxu0 %v154_v38  ;;  %v127_v38 = vld [vmem:[#allocation2 + $0x190] sm:$0xff] }
  0x9d   :  { %2505 = vmatmul.mubr.bf16.gmra.mrb[24].mxu1 %v250_v39  ;;  %2428 = vmatprep.mubr.bf16.mxu0 %v155_v40  ;;  %v128_v39 = vld [vmem:[#allocation2 + $0x198] sm:$0xff]  ;;  %v223_v40 = vld [vmem:[#allocation5 + $0x190] sm:$0xff] }
  0x9e   :  { %2508 = vmatprep.mubr.bf16.mxu1 %v251_v41  ;;  %v224_v41 = vld [vmem:[#allocation5 + $0x198] sm:$0xff]  ;;  %v166_v46 = vpack.c.bf16 %v128_v39, %v127_v38 }
  0x9f   :  { %v262_v47 = vpack.c.bf16 %v224_v41, %v223_v40 }
  0xa4   :  { %2429 = vmatmul.mubr.bf16.gmra.mrb[28].mxu0 %v156_v50  ;;  %v131_v50 = vld [vmem:[#allocation2 + $0x1b0] sm:$0xff] }
  0xa5   :  { %2509 = vmatmul.mubr.bf16.gmra.mrb[28].mxu1 %v252_v51  ;;  %2432 = vmatprep.mubr.bf16.mxu0 %v157_v52  ;;  %v132_v51 = vld [vmem:[#allocation2 + $0x1b8] sm:$0xff]  ;;  %v227_v52 = vld [vmem:[#allocation5 + $0x1b0] sm:$0xff] }
  0xa6   :  { %2512 = vmatprep.mubr.bf16.mxu1 %v253_v53  ;;  %v228_v53 = vld [vmem:[#allocation5 + $0x1b8] sm:$0xff]  ;;  %v168_v58 = vpack.c.bf16 %v132_v51, %v131_v50 }
  0xa7   :  { %v264_v59 = vpack.c.bf16 %v228_v53, %v227_v52 }
  0xac   :  { %2433 = vmatmul.mubr.bf16.gmra.mrb[32].mxu0 %v158_v62  ;;  %v135_v62 = vld [vmem:[#allocation2 + $0x1d0] sm:$0xff] }
  0xad   :  { %2513 = vmatmul.mubr.bf16.gmra.mrb[32].mxu1 %v254_v63  ;;  %2436 = vmatprep.mubr.bf16.mxu0 %v159_v0  ;;  %v136_v63 = vld [vmem:[#allocation2 + $0x1d8] sm:$0xff]  ;;  %v231_v0 = vld [vmem:[#allocation5 + $0x1d0] sm:$0xff] }
  0xae   :  { %2516 = vmatprep.mubr.bf16.mxu1 %v255_v1  ;;  %v232_v1 = vld [vmem:[#allocation5 + $0x1d8] sm:$0xff]  ;;  %v170_v6 = vpack.c.bf16 %v136_v63, %v135_v62 }
  0xaf   :  { %v266_v7 = vpack.c.bf16 %v232_v1, %v231_v0 }
  0xb4   :  { %2437 = vmatmul.mubr.bf16.gmra.mrb[36].mxu0 %v160_v10  ;;  %v139_v10 = vld [vmem:[#allocation2 + $0x1f0] sm:$0xff] }
  0xb5   :  { %2517 = vmatmul.mubr.bf16.gmra.mrb[36].mxu1 %v256_v11  ;;  %2440 = vmatprep.mubr.bf16.mxu0 %v161_v12  ;;  %v140_v11 = vld [vmem:[#allocation2 + $0x1f8] sm:$0xff]  ;;  %v235_v12 = vld [vmem:[#allocation5 + $0x1f0] sm:$0xff] }
  0xb6   :  { %2520 = vmatprep.mubr.bf16.mxu1 %v257_v13  ;;  %v236_v13 = vld [vmem:[#allocation5 + $0x1f8] sm:$0xff]  ;;  %v172_v14 = vpack.c.bf16 %v140_v11, %v139_v10 }
  0xb7   :  { %v268_v15 = vpack.c.bf16 %v236_v13, %v235_v12 }
  0xbc   :  { %2441 = vmatmul.mubr.bf16.gmra.mrb[40].mxu0 %v162_v22 }
  0xbd   :  { %2521 = vmatmul.mubr.bf16.gmra.mrb[40].mxu1 %v258_v23  ;;  %2444 = vmatprep.mubr.bf16.mxu0 %v163_v24 }
  0xbe   :  { %2524 = vmatprep.mubr.bf16.mxu1 %v259_v25 }
  0xc4   :  { %2445 = vmatmul.mubr.bf16.gmra.mrb[44].mxu0 %v164_v34 }
  0xc5   :  { %2525 = vmatmul.mubr.bf16.gmra.mrb[44].mxu1 %v260_v35  ;;  %2448 = vmatprep.mubr.bf16.mxu0 %v165_v36 }
  0xc6   :  { %2528 = vmatprep.mubr.bf16.mxu1 %v261_v37 }
  0xcc   :  { %2449 = vmatmul.mubr.bf16.gmra.mrb[48].mxu0 %v166_v46 }
  0xcd   :  { %2529 = vmatmul.mubr.bf16.gmra.mrb[48].mxu1 %v262_v47  ;;  %2452 = vmatprep.mubr.bf16.mxu0 %v167_v48 }
  0xce   :  { %2532 = vmatprep.mubr.bf16.mxu1 %v263_v49 }
  0xd4   :  { %2453 = vmatmul.mubr.bf16.gmra.mrb[52].mxu0 %v168_v58 }
  0xd5   :  { %2533 = vmatmul.mubr.bf16.gmra.mrb[52].mxu1 %v264_v59  ;;  %2456 = vmatprep.mubr.bf16.mxu0 %v169_v60 }
  0xd6   :  { %2536 = vmatprep.mubr.bf16.mxu1 %v265_v61 }
  0xdc   :  { %2457 = vmatmul.mubr.bf16.gmra.mrb[56].mxu0 %v170_v6 }
  0xdd   :  { %2537 = vmatmul.mubr.bf16.gmra.mrb[56].mxu1 %v266_v7  ;;  %2460 = vmatprep.mubr.bf16.mxu0 %v171_v8 }
  0xde   :  { %2540 = vmatprep.mubr.bf16.mxu1 %v267_v9 }
  0xe4   :  { %2461 = vmatmul.mubr.bf16.gmra.mrb[60].mxu0 %v172_v14 }
  0xe5   :  { %2541 = vmatmul.mubr.bf16.gmra.mrb[60].mxu1 %v268_v15 }
 0x13f   :  { %v2402_v16 = vpop.f32.mrb[0].mxu0 }
 0x140   :  { %v2482_v17 = vpop.f32.mrb[0].mxu1  ;;  %v367_v18 = vpop.f32.mrb[1].mxu0 }
 0x141   :  { %v1040_v19 = vpop.f32.mrb[1].mxu1  ;;  %v2403_v20 = vpop.f32.mrb[2].mxu0 }
 0x142   :  { %v1930_v21 = vpack.c.bf16 %v2403_v20, %v2402_v16  ;;  %v2483_v22 = vpop.f32.mrb[2].mxu1  ;;  %v370_v23 = vpop.f32.mrb[3].mxu0 }
 0x143   :  { %v2090_v24 = vpack.c.bf16 %v2483_v22, %v2482_v17  ;;  %v1925_v25 = vpack.c.bf16 %v370_v23, %v367_v18  ;;  %v1043_v26 = vpop.f32.mrb[3].mxu1 }
 0x144   :  { %2242 = vst [vmem:[#allocation10 + $0x8] sm:$0xff] %v1930_v21   ;;  %v2085_v27 = vpack.c.bf16 %v1043_v26, %v1040_v19 }
 0x145   :  { %2273 = vst [vmem:[#allocation11 + $0x8] sm:$0xff] %v2090_v24   ;;  %1926 = vst [vmem:[#allocation10] sm:$0xff] %v1925_v25  }
 0x146   :  { %2086 = vst [vmem:[#allocation11] sm:$0xff] %v2085_v27  }
 0x147   :  { %v2406_v28 = vpop.f32.mrb[4].mxu0 }
 0x148   :  { %v2486_v29 = vpop.f32.mrb[4].mxu1  ;;  %v383_v30 = vpop.f32.mrb[5].mxu0 }
 0x149   :  { %v1056_v31 = vpop.f32.mrb[5].mxu1  ;;  %v2407_v32 = vpop.f32.mrb[6].mxu0 }
 0x14a   :  { %v1940_v33 = vpack.c.bf16 %v2407_v32, %v2406_v28  ;;  %v2487_v34 = vpop.f32.mrb[6].mxu1  ;;  %v386_v35 = vpop.f32.mrb[7].mxu0 }
 0x14b   :  { %v2100_v36 = vpack.c.bf16 %v2487_v34, %v2486_v29  ;;  %v1935_v37 = vpack.c.bf16 %v386_v35, %v383_v30  ;;  %v1059_v38 = vpop.f32.mrb[7].mxu1 }
 0x14c   :  { %2244 = vst [vmem:[#allocation10 + $0x18] sm:$0xff] %v1940_v33   ;;  %v2095_v39 = vpack.c.bf16 %v1059_v38, %v1056_v31 }
 0x14d   :  { %2275 = vst [vmem:[#allocation11 + $0x18] sm:$0xff] %v2100_v36   ;;  %2243 = vst [vmem:[#allocation10 + $0x10] sm:$0xff] %v1935_v37  }
 0x14e   :  { %2274 = vst [vmem:[#allocation11 + $0x10] sm:$0xff] %v2095_v39  }
 0x14f   :  { %v2410_v40 = vpop.f32.mrb[8].mxu0 }
 0x150   :  { %v2490_v41 = vpop.f32.mrb[8].mxu1  ;;  %v399_v42 = vpop.f32.mrb[9].mxu0 }
 0x151   :  { %v1072_v43 = vpop.f32.mrb[9].mxu1  ;;  %v2411_v44 = vpop.f32.mrb[10].mxu0 }
 0x152   :  { %v1950_v45 = vpack.c.bf16 %v2411_v44, %v2410_v40  ;;  %v2491_v46 = vpop.f32.mrb[10].mxu1  ;;  %v402_v47 = vpop.f32.mrb[11].mxu0 }
 0x153   :  { %v2110_v48 = vpack.c.bf16 %v2491_v46, %v2490_v41  ;;  %v1945_v49 = vpack.c.bf16 %v402_v47, %v399_v42  ;;  %v1075_v50 = vpop.f32.mrb[11].mxu1 }
 0x154   :  { %2246 = vst [vmem:[#allocation10 + $0x28] sm:$0xff] %v1950_v45   ;;  %v2105_v51 = vpack.c.bf16 %v1075_v50, %v1072_v43 }
 0x155   :  { %2277 = vst [vmem:[#allocation11 + $0x28] sm:$0xff] %v2110_v48   ;;  %2245 = vst [vmem:[#allocation10 + $0x20] sm:$0xff] %v1945_v49  }
 0x156   :  { %2276 = vst [vmem:[#allocation11 + $0x20] sm:$0xff] %v2105_v51  }
 0x157   :  { %v2414_v52 = vpop.f32.mrb[12].mxu0 }
 0x158   :  { %v2494_v53 = vpop.f32.mrb[12].mxu1  ;;  %v415_v54 = vpop.f32.mrb[13].mxu0 }
 0x159   :  { %v1088_v55 = vpop.f32.mrb[13].mxu1  ;;  %v2415_v56 = vpop.f32.mrb[14].mxu0 }
 0x15a   :  { %v1960_v57 = vpack.c.bf16 %v2415_v56, %v2414_v52  ;;  %v2495_v58 = vpop.f32.mrb[14].mxu1  ;;  %v418_v59 = vpop.f32.mrb[15].mxu0 }
 0x15b   :  { %v2120_v60 = vpack.c.bf16 %v2495_v58, %v2494_v53  ;;  %v1955_v61 = vpack.c.bf16 %v418_v59, %v415_v54  ;;  %v1091_v62 = vpop.f32.mrb[15].mxu1 }
 0x15c   :  { %2248 = vst [vmem:[#allocation10 + $0x38] sm:$0xff] %v1960_v57   ;;  %v2115_v63 = vpack.c.bf16 %v1091_v62, %v1088_v55 }
 0x15d   :  { %2279 = vst [vmem:[#allocation11 + $0x38] sm:$0xff] %v2120_v60   ;;  %2247 = vst [vmem:[#allocation10 + $0x30] sm:$0xff] %v1955_v61  }
 0x15e   :  { %2278 = vst [vmem:[#allocation11 + $0x30] sm:$0xff] %v2115_v63  }
 0x15f   :  { %v2418_v0 = vpop.f32.mrb[16].mxu0 }
 0x160   :  { %v2498_v1 = vpop.f32.mrb[16].mxu1  ;;  %v431_v2 = vpop.f32.mrb[17].mxu0 }
 0x161   :  { %v1104_v3 = vpop.f32.mrb[17].mxu1  ;;  %v2419_v4 = vpop.f32.mrb[18].mxu0 }
 0x162   :  { %v1970_v5 = vpack.c.bf16 %v2419_v4, %v2418_v0  ;;  %v2499_v6 = vpop.f32.mrb[18].mxu1  ;;  %v434_v7 = vpop.f32.mrb[19].mxu0 }
 0x163   :  { %v2130_v8 = vpack.c.bf16 %v2499_v6, %v2498_v1  ;;  %v1965_v9 = vpack.c.bf16 %v434_v7, %v431_v2  ;;  %v1107_v10 = vpop.f32.mrb[19].mxu1 }
 0x164   :  { %2250 = vst [vmem:[#allocation10 + $0x48] sm:$0xff] %v1970_v5   ;;  %v2125_v11 = vpack.c.bf16 %v1107_v10, %v1104_v3 }
 0x165   :  { %2281 = vst [vmem:[#allocation11 + $0x48] sm:$0xff] %v2130_v8   ;;  %2249 = vst [vmem:[#allocation10 + $0x40] sm:$0xff] %v1965_v9  }
 0x166   :  { %2280 = vst [vmem:[#allocation11 + $0x40] sm:$0xff] %v2125_v11  }
 0x167   :  { %v2422_v12 = vpop.f32.mrb[20].mxu0 }
 0x168   :  { %v2502_v13 = vpop.f32.mrb[20].mxu1  ;;  %v447_v14 = vpop.f32.mrb[21].mxu0 }
 0x169   :  { %v1120_v15 = vpop.f32.mrb[21].mxu1  ;;  %v2423_v16 = vpop.f32.mrb[22].mxu0 }
 0x16a   :  { %v1980_v17 = vpack.c.bf16 %v2423_v16, %v2422_v12  ;;  %v2503_v18 = vpop.f32.mrb[22].mxu1  ;;  %v450_v19 = vpop.f32.mrb[23].mxu0 }
 0x16b   :  { %v2140_v20 = vpack.c.bf16 %v2503_v18, %v2502_v13  ;;  %v1975_v21 = vpack.c.bf16 %v450_v19, %v447_v14  ;;  %v1123_v22 = vpop.f32.mrb[23].mxu1 }
 0x16c   :  { %2252 = vst [vmem:[#allocation10 + $0x58] sm:$0xff] %v1980_v17   ;;  %v2135_v23 = vpack.c.bf16 %v1123_v22, %v1120_v15 }
 0x16d   :  { %2283 = vst [vmem:[#allocation11 + $0x58] sm:$0xff] %v2140_v20   ;;  %2251 = vst [vmem:[#allocation10 + $0x50] sm:$0xff] %v1975_v21  }
 0x16e   :  { %2282 = vst [vmem:[#allocation11 + $0x50] sm:$0xff] %v2135_v23  }
 0x16f   :  { %v2426_v24 = vpop.f32.mrb[24].mxu0 }
 0x170   :  { %v2506_v25 = vpop.f32.mrb[24].mxu1  ;;  %v463_v26 = vpop.f32.mrb[25].mxu0 }
 0x171   :  { %v1136_v27 = vpop.f32.mrb[25].mxu1  ;;  %v2427_v28 = vpop.f32.mrb[26].mxu0 }
 0x172   :  { %v1990_v29 = vpack.c.bf16 %v2427_v28, %v2426_v24  ;;  %v2507_v30 = vpop.f32.mrb[26].mxu1  ;;  %v466_v31 = vpop.f32.mrb[27].mxu0 }
 0x173   :  { %v2150_v32 = vpack.c.bf16 %v2507_v30, %v2506_v25  ;;  %v1985_v33 = vpack.c.bf16 %v466_v31, %v463_v26  ;;  %v1139_v34 = vpop.f32.mrb[27].mxu1 }
 0x174   :  { %2254 = vst [vmem:[#allocation10 + $0x68] sm:$0xff] %v1990_v29   ;;  %v2145_v35 = vpack.c.bf16 %v1139_v34, %v1136_v27 }
 0x175   :  { %2285 = vst [vmem:[#allocation11 + $0x68] sm:$0xff] %v2150_v32   ;;  %2253 = vst [vmem:[#allocation10 + $0x60] sm:$0xff] %v1985_v33  }
 0x176   :  { %2284 = vst [vmem:[#allocation11 + $0x60] sm:$0xff] %v2145_v35  }
 0x177   :  { %v2430_v36 = vpop.f32.mrb[28].mxu0 }
 0x178   :  { %v2510_v37 = vpop.f32.mrb[28].mxu1  ;;  %v479_v38 = vpop.f32.mrb[29].mxu0 }
 0x179   :  { %v1152_v39 = vpop.f32.mrb[29].mxu1  ;;  %v2431_v40 = vpop.f32.mrb[30].mxu0 }
 0x17a   :  { %v2000_v41 = vpack.c.bf16 %v2431_v40, %v2430_v36  ;;  %v2511_v42 = vpop.f32.mrb[30].mxu1  ;;  %v482_v43 = vpop.f32.mrb[31].mxu0 }
 0x17b   :  { %v2160_v44 = vpack.c.bf16 %v2511_v42, %v2510_v37  ;;  %v1995_v45 = vpack.c.bf16 %v482_v43, %v479_v38  ;;  %v1155_v46 = vpop.f32.mrb[31].mxu1 }
 0x17c   :  { %2256 = vst [vmem:[#allocation10 + $0x78] sm:$0xff] %v2000_v41   ;;  %v2155_v47 = vpack.c.bf16 %v1155_v46, %v1152_v39 }
 0x17d   :  { %2287 = vst [vmem:[#allocation11 + $0x78] sm:$0xff] %v2160_v44   ;;  %2255 = vst [vmem:[#allocation10 + $0x70] sm:$0xff] %v1995_v45  }
 0x17e   :  { %2286 = vst [vmem:[#allocation11 + $0x70] sm:$0xff] %v2155_v47  }
 0x17f   :  { %v2434_v48 = vpop.f32.mrb[32].mxu0 }
 0x180   :  { %v2514_v49 = vpop.f32.mrb[32].mxu1  ;;  %v495_v50 = vpop.f32.mrb[33].mxu0 }
 0x181   :  { %v1168_v51 = vpop.f32.mrb[33].mxu1  ;;  %v2435_v52 = vpop.f32.mrb[34].mxu0 }
 0x182   :  { %v2010_v53 = vpack.c.bf16 %v2435_v52, %v2434_v48  ;;  %v2515_v54 = vpop.f32.mrb[34].mxu1  ;;  %v498_v55 = vpop.f32.mrb[35].mxu0 }
 0x183   :  { %v2170_v56 = vpack.c.bf16 %v2515_v54, %v2514_v49  ;;  %v2005_v57 = vpack.c.bf16 %v498_v55, %v495_v50  ;;  %v1171_v58 = vpop.f32.mrb[35].mxu1 }
 0x184   :  { %2258 = vst [vmem:[#allocation10 + $0x88] sm:$0xff] %v2010_v53   ;;  %v2165_v59 = vpack.c.bf16 %v1171_v58, %v1168_v51 }
 0x185   :  { %2289 = vst [vmem:[#allocation11 + $0x88] sm:$0xff] %v2170_v56   ;;  %2257 = vst [vmem:[#allocation10 + $0x80] sm:$0xff] %v2005_v57  }
 0x186   :  { %2288 = vst [vmem:[#allocation11 + $0x80] sm:$0xff] %v2165_v59  }
 0x187   :  { %v2438_v60 = vpop.f32.mrb[36].mxu0 }
 0x188   :  { %v2518_v61 = vpop.f32.mrb[36].mxu1  ;;  %v511_v62 = vpop.f32.mrb[37].mxu0 }
 0x189   :  { %v1184_v63 = vpop.f32.mrb[37].mxu1  ;;  %v2439_v0 = vpop.f32.mrb[38].mxu0 }
 0x18a   :  { %v2020_v1 = vpack.c.bf16 %v2439_v0, %v2438_v60  ;;  %v2519_v2 = vpop.f32.mrb[38].mxu1  ;;  %v514_v3 = vpop.f32.mrb[39].mxu0 }
 0x18b   :  { %v2180_v4 = vpack.c.bf16 %v2519_v2, %v2518_v61  ;;  %v2015_v5 = vpack.c.bf16 %v514_v3, %v511_v62  ;;  %v1187_v6 = vpop.f32.mrb[39].mxu1 }
 0x18c   :  { %2260 = vst [vmem:[#allocation10 + $0x98] sm:$0xff] %v2020_v1   ;;  %v2175_v7 = vpack.c.bf16 %v1187_v6, %v1184_v63 }
 0x18d   :  { %2291 = vst [vmem:[#allocation11 + $0x98] sm:$0xff] %v2180_v4   ;;  %2259 = vst [vmem:[#allocation10 + $0x90] sm:$0xff] %v2015_v5  }
 0x18e   :  { %2290 = vst [vmem:[#allocation11 + $0x90] sm:$0xff] %v2175_v7  }
 0x18f   :  { %v2442_v8 = vpop.f32.mrb[40].mxu0 }
 0x190   :  { %v2522_v9 = vpop.f32.mrb[40].mxu1  ;;  %v527_v10 = vpop.f32.mrb[41].mxu0 }
 0x191   :  { %v1200_v11 = vpop.f32.mrb[41].mxu1  ;;  %v2443_v12 = vpop.f32.mrb[42].mxu0 }
 0x192   :  { %v2030_v13 = vpack.c.bf16 %v2443_v12, %v2442_v8  ;;  %v2523_v14 = vpop.f32.mrb[42].mxu1  ;;  %v530_v15 = vpop.f32.mrb[43].mxu0 }
 0x193   :  { %v2190_v16 = vpack.c.bf16 %v2523_v14, %v2522_v9  ;;  %v2025_v17 = vpack.c.bf16 %v530_v15, %v527_v10  ;;  %v1203_v18 = vpop.f32.mrb[43].mxu1 }
 0x194   :  { %2262 = vst [vmem:[#allocation10 + $0xa8] sm:$0xff] %v2030_v13   ;;  %v2185_v19 = vpack.c.bf16 %v1203_v18, %v1200_v11 }
 0x195   :  { %2293 = vst [vmem:[#allocation11 + $0xa8] sm:$0xff] %v2190_v16   ;;  %2261 = vst [vmem:[#allocation10 + $0xa0] sm:$0xff] %v2025_v17  }
 0x196   :  { %2292 = vst [vmem:[#allocation11 + $0xa0] sm:$0xff] %v2185_v19  }
 0x197   :  { %v2446_v20 = vpop.f32.mrb[44].mxu0 }
 0x198   :  { %v2526_v21 = vpop.f32.mrb[44].mxu1  ;;  %v543_v22 = vpop.f32.mrb[45].mxu0 }
 0x199   :  { %v1216_v23 = vpop.f32.mrb[45].mxu1  ;;  %v2447_v24 = vpop.f32.mrb[46].mxu0 }
 0x19a   :  { %v2040_v25 = vpack.c.bf16 %v2447_v24, %v2446_v20  ;;  %v2527_v26 = vpop.f32.mrb[46].mxu1  ;;  %v546_v27 = vpop.f32.mrb[47].mxu0 }
 0x19b   :  { %v2200_v28 = vpack.c.bf16 %v2527_v26, %v2526_v21  ;;  %v2035_v29 = vpack.c.bf16 %v546_v27, %v543_v22  ;;  %v1219_v30 = vpop.f32.mrb[47].mxu1 }
 0x19c   :  { %2264 = vst [vmem:[#allocation10 + $0xb8] sm:$0xff] %v2040_v25   ;;  %v2195_v31 = vpack.c.bf16 %v1219_v30, %v1216_v23 }
 0x19d   :  { %2295 = vst [vmem:[#allocation11 + $0xb8] sm:$0xff] %v2200_v28   ;;  %2263 = vst [vmem:[#allocation10 + $0xb0] sm:$0xff] %v2035_v29  }
 0x19e   :  { %2294 = vst [vmem:[#allocation11 + $0xb0] sm:$0xff] %v2195_v31  }
 0x19f   :  { %v2450_v32 = vpop.f32.mrb[48].mxu0 }
 0x1a0   :  { %v2530_v33 = vpop.f32.mrb[48].mxu1  ;;  %v559_v34 = vpop.f32.mrb[49].mxu0 }
 0x1a1   :  { %v1232_v35 = vpop.f32.mrb[49].mxu1  ;;  %v2451_v36 = vpop.f32.mrb[50].mxu0 }
 0x1a2   :  { %v2050_v37 = vpack.c.bf16 %v2451_v36, %v2450_v32  ;;  %v2531_v38 = vpop.f32.mrb[50].mxu1  ;;  %v562_v39 = vpop.f32.mrb[51].mxu0 }
 0x1a3   :  { %v2210_v40 = vpack.c.bf16 %v2531_v38, %v2530_v33  ;;  %v2045_v41 = vpack.c.bf16 %v562_v39, %v559_v34  ;;  %v1235_v42 = vpop.f32.mrb[51].mxu1 }
 0x1a4   :  { %2266 = vst [vmem:[#allocation10 + $0xc8] sm:$0xff] %v2050_v37   ;;  %v2205_v43 = vpack.c.bf16 %v1235_v42, %v1232_v35 }
 0x1a5   :  { %2297 = vst [vmem:[#allocation11 + $0xc8] sm:$0xff] %v2210_v40   ;;  %2265 = vst [vmem:[#allocation10 + $0xc0] sm:$0xff] %v2045_v41  }
 0x1a6   :  { %2296 = vst [vmem:[#allocation11 + $0xc0] sm:$0xff] %v2205_v43  }
 0x1a7   :  { %v2454_v44 = vpop.f32.mrb[52].mxu0 }
 0x1a8   :  { %v2534_v45 = vpop.f32.mrb[52].mxu1  ;;  %v575_v46 = vpop.f32.mrb[53].mxu0 }
 0x1a9   :  { %v1248_v47 = vpop.f32.mrb[53].mxu1  ;;  %v2455_v48 = vpop.f32.mrb[54].mxu0 }
 0x1aa   :  { %v2060_v49 = vpack.c.bf16 %v2455_v48, %v2454_v44  ;;  %v2535_v50 = vpop.f32.mrb[54].mxu1  ;;  %v578_v51 = vpop.f32.mrb[55].mxu0 }
 0x1ab   :  { %v2220_v52 = vpack.c.bf16 %v2535_v50, %v2534_v45  ;;  %v2055_v53 = vpack.c.bf16 %v578_v51, %v575_v46  ;;  %v1251_v54 = vpop.f32.mrb[55].mxu1 }
 0x1ac   :  { %2268 = vst [vmem:[#allocation10 + $0xd8] sm:$0xff] %v2060_v49   ;;  %v2215_v55 = vpack.c.bf16 %v1251_v54, %v1248_v47 }
 0x1ad   :  { %2299 = vst [vmem:[#allocation11 + $0xd8] sm:$0xff] %v2220_v52   ;;  %2267 = vst [vmem:[#allocation10 + $0xd0] sm:$0xff] %v2055_v53  }
 0x1ae   :  { %2298 = vst [vmem:[#allocation11 + $0xd0] sm:$0xff] %v2215_v55  }
 0x1af   :  { %v2458_v56 = vpop.f32.mrb[56].mxu0 }
 0x1b0   :  { %v2538_v57 = vpop.f32.mrb[56].mxu1  ;;  %v591_v58 = vpop.f32.mrb[57].mxu0 }
 0x1b1   :  { %v1264_v59 = vpop.f32.mrb[57].mxu1  ;;  %v2459_v60 = vpop.f32.mrb[58].mxu0 }
 0x1b2   :  { %v2070_v61 = vpack.c.bf16 %v2459_v60, %v2458_v56  ;;  %v2539_v62 = vpop.f32.mrb[58].mxu1  ;;  %v594_v63 = vpop.f32.mrb[59].mxu0 }
 0x1b3   :  { %v2230_v0 = vpack.c.bf16 %v2539_v62, %v2538_v57  ;;  %v2065_v1 = vpack.c.bf16 %v594_v63, %v591_v58  ;;  %v1267_v2 = vpop.f32.mrb[59].mxu1 }
 0x1b4   :  { %2270 = vst [vmem:[#allocation10 + $0xe8] sm:$0xff] %v2070_v61   ;;  %v2225_v3 = vpack.c.bf16 %v1267_v2, %v1264_v59 }
 0x1b5   :  { %2301 = vst [vmem:[#allocation11 + $0xe8] sm:$0xff] %v2230_v0   ;;  %2269 = vst [vmem:[#allocation10 + $0xe0] sm:$0xff] %v2065_v1  }
 0x1b6   :  { %2300 = vst [vmem:[#allocation11 + $0xe0] sm:$0xff] %v2225_v3  }
 0x1b7   :  { %v2462_v4 = vpop.f32.mrb[60].mxu0 }
 0x1b8   :  { %v2542_v5 = vpop.f32.mrb[60].mxu1  ;;  %v607_v6 = vpop.f32.mrb[61].mxu0 }
 0x1b9   :  { %v1280_v7 = vpop.f32.mrb[61].mxu1  ;;  %v2463_v8 = vpop.f32.mrb[62].mxu0 }
 0x1ba   :  { %v2080_v9 = vpack.c.bf16 %v2463_v8, %v2462_v4  ;;  %v2543_v10 = vpop.f32.mrb[62].mxu1  ;;  %v610_v11 = vpop.f32.mrb[63].mxu0 }
 0x1bb   :  { %v2240_v12 = vpack.c.bf16 %v2543_v10, %v2542_v5  ;;  %v2075_v13 = vpack.c.bf16 %v610_v11, %v607_v6  ;;  %v1283_v14 = vpop.f32.mrb[63].mxu1 }
 0x1bc   :  { %2272 = vst [vmem:[#allocation10 + $0xf8] sm:$0xff] %v2080_v9   ;;  %v2235_v15 = vpack.c.bf16 %v1283_v14, %v1280_v7 }
 0x1bd   :  { %2303 = vst [vmem:[#allocation11 + $0xf8] sm:$0xff] %v2240_v12   ;;  %2271 = vst [vmem:[#allocation10 + $0xf0] sm:$0xff] %v2075_v13  }
 0x1be   :  { %2302 = vst [vmem:[#allocation11 + $0xf0] sm:$0xff] %v2235_v15  }
 0x1bf   :  { %2669 = shalt.err (!%p2666_p8)
}
 0x1c0   :  { %s2670_s23 = scalar_lea.hbm %s2854_s4, 4096 }
 0x1c1   :  { %p2671_p9 = scmp.ne.s32.totalorder %s2854_s4, %s2670_s23  ;;  %p2674_p10 = scmp.lt.u32.totalorder %s2670_s23, %s2854_s4 }
 0x1c3   :  { %p2676_p11 = pnand %p2674_p10, %p2671_p9 }
 0x1c5   :  { %2679 = shalt.err (!%p2676_p11)
}
 0x1c6   :  { %1626 = dma.vmem_to_hbm [thread:$0]  %s1621_s1, 4096, %s2854_s4, [#allocation4], %s2717_s0, %s2717_s0, %s2718_s21  }
 0x1c7   :  { %s2680_s30 = scalar_lea.vmem %s2813_s18, 4096  ;;  %p2685_p13 = scmp.lt.s32.totalorder %s2813_s18, %s2813_s18 }
 0x1c8   :  { %p2681_p12 = scmp.ne.s32.totalorder %s2813_s18, %s2680_s30  ;;  %p2686_p0 = scmp.lt.s32.totalorder %s2680_s30, %s2680_s30 }
 0x1ca   :  { %p2687_p1 = por %p2686_p0, %p2685_p13 }
 0x1cc   :  { %p2688_p2 = pnand %p2687_p1, %p2681_p12 }
 0x1ce   :  { %2691 = shalt.err (!%p2688_p2)
}
 0x1cf   :  { %s2692_s8 = scalar_lea.hbm %s2855_s5, 4096 }
 0x1d0   :  { %p2693_p3 = scmp.ne.s32.totalorder %s2855_s5, %s2692_s8  ;;  %p2696_p4 = scmp.lt.u32.totalorder %s2692_s8, %s2855_s5 }
 0x1d2   :  { %p2698_p5 = pnand %p2696_p4, %p2693_p3 }
 0x1d4   :  { %2701 = shalt.err (!%p2698_p5)
}
 0x1d5   :  { %1638 = dma.vmem_to_hbm [thread:$0]  %s2813_s18, 4096, %s2855_s5, [#allocation12], %s2717_s0, %s2717_s0, %s2718_s21  }
 0x1d6   :  { %2708 = dma.done.wait [#allocation4], 4096  }
 0x1d7   :  { %2709 = vsyncadd [#allocation4], 4294963200 }
 0x1d8   :  { %2710 = dma.done.wait [#allocation12], 4096  }
 0x1d9   :  { %2711 = vsyncadd [#allocation12], 4294963200 }
 0x1da   :  { %1645 = vsyncpa [#allocation3], 1 }
 0x1db   :  { %1646 = vsyncpa [#allocation6], 1 }
 0x1dc   :  { %1647 = vsyncpa [#allocation9], 1 }
 0x1dd   :  { %1648 = vsyncpa [#allocation4], 1 }
 0x1de   :  { %1649 = vsyncpa [#allocation12], 1 }

</bundles_post_ra>
